<compile_context>
chip_gen: v5e
topology: v5e:2x2
jax: 0.10.0
libtpu: 0.0.40
codegen_flags: <defaults>
</compile_context>

<pallas_src>
import numpy as np
import jax
import jax.numpy as jnp
from jax import lax
from jax.experimental import pallas as pl
from jax.experimental.pallas import tpu as pltpu

# ---------------- configuration (the args the torch module receives) ----------------
INPUT_DIM = 2
HIDDEN_DIM = 32
NUM_LAYERS = 2
N_S = 8                      # sensor points per function
N_F = 2                      # batch of functions
N_X = 16                     # query points per function
HIDDEN_LIST_U = [16, 16]     # functional (U_Net) MLP hidden sizes

THETA_DIM = (INPUT_DIM + 1) * N_S                       # 24 = P_Net_MFP input width
_U_DIMS = [INPUT_DIM] + HIDDEN_LIST_U + [1]             # [2, 16, 16, 1]
U_NET_SIZE = sum(_U_DIMS[i] * _U_DIMS[i + 1] + _U_DIMS[i + 1]
                 for i in range(len(_U_DIMS) - 1))      # 337
PARAMS_PAD = 3 * 128                                    # 384: lane-dense padded params width
UOUT_PAD = 128                                          # lane-dense padded U_Net output slab
assert _U_DIMS[-1] == 1, "final U_Net layer assumed scalar-output"


# ---------------- packed layout of the generated params (pre-permuted linearOut) --------
def _packed_permutation():
    """packed[j] = canonical[perm[j]].

    canonical: per U_Net layer, torch nn.Linear weight (dout, din) row-major, then bias.
    packed:    per U_Net layer, weight transposed to (din, dout) row-major, then bias, so
               the kernel reads each generated weight row as a contiguous (.., dout)
               lane slice at a static offset (no in-kernel reshape/transpose).
    """
    perm = []
    off = 0
    for din, dout in zip(_U_DIMS[:-1], _U_DIMS[1:]):
        for d in range(din):
            for o in range(dout):
                perm.append(off + o * din + d)
        for o in range(dout):
            perm.append(off + din * dout + o)
        off += din * dout + dout
    return np.asarray(perm, dtype=np.int32)


_PACKED_PERM = _packed_permutation()
_INV_PERM = np.argsort(_PACKED_PERM)                    # packed -> canonical column order

# static (w_off, b_off) per U_Net layer inside the packed params vector
_LAYER_OFFS = []
_off = 0
for _din, _dout in zip(_U_DIMS[:-1], _U_DIMS[1:]):
    _LAYER_OFFS.append((_off, _off + _din * _dout))
    _off += _din * _dout + _dout


# ---------------- one-time packing of ALL P_Net weights into a single slab --------------
def _align8(n):
    return ((n + 7) // 8) * 8


_ROWS = {}
_r = 0
_ROWS["w_out"] = _r; _r += _align8(HIDDEN_DIM)          # (32, 384)
_ROWS["b_out"] = _r; _r += 8                            # (1, 384)
_ROWS["w_in"] = _r;  _r += _align8(THETA_DIM)           # (24, 32) in lanes 0:32
_ROWS["b_in"] = _r;  _r += 8
for _l in range(NUM_LAYERS):
    _ROWS[f"w_h{_l}"] = _r; _r += _align8(HIDDEN_DIM)   # (32, 32)
    _ROWS[f"b_h{_l}"] = _r; _r += 8
WSLAB_ROWS = _r                                          # 152 rows, 8-aligned blocks


def pack_p_net_mfp_weights(pw):
    """Init-time relayout (outside the hot path):
       * linearOut columns permuted into packed order and zero-padded 337 -> 384
       * all 6 weight/bias tensors packed into ONE (WSLAB_ROWS, 384) f32 slab so the
         kernel takes a single weight DMA and slices it at static, 8-row-aligned offsets.
    Pure layout plumbing; no numerical change."""
    pad = PARAMS_PAD - U_NET_SIZE
    slab = jnp.zeros((WSLAB_ROWS, PARAMS_PAD), jnp.float32)
    slab = slab.at[_ROWS["w_out"]:_ROWS["w_out"] + HIDDEN_DIM, :].set(
        jnp.pad(pw["w_out"][:, _PACKED_PERM], ((0, 0), (0, pad))))
    slab = slab.at[_ROWS["b_out"]:_ROWS["b_out"] + 1, :].set(
        jnp.pad(pw["b_out"][:, _PACKED_PERM], ((0, 0), (0, pad))))
    slab = slab.at[_ROWS["w_in"]:_ROWS["w_in"] + THETA_DIM, :HIDDEN_DIM].set(pw["w_in"])
    slab = slab.at[_ROWS["b_in"]:_ROWS["b_in"] + 1, :HIDDEN_DIM].set(pw["b_in"])
    for l in range(NUM_LAYERS):
        slab = slab.at[_ROWS[f"w_h{l}"]:_ROWS[f"w_h{l}"] + HIDDEN_DIM,
                       :HIDDEN_DIM].set(pw["w_layers"][l])
        slab = slab.at[_ROWS[f"b_h{l}"]:_ROWS[f"b_h{l}"] + 1,
                       :HIDDEN_DIM].set(pw["b_layers"][l])
    return slab


# ---------------- fused kernel: P_Net_MFP + per-function U_Net ----------------
def fused_kernel(theta_ref, x_ref, w_ref, params_ref, uout_ref):
    HD = HIDDEN_DIM

    # -------- static slices out of the single weight slab (one input DMA) --------
    w_out = w_ref[_ROWS["w_out"]:_ROWS["w_out"] + HD, :]          # (32, 384)
    b_out = w_ref[_ROWS["b_out"]:_ROWS["b_out"] + 1, :]           # (1, 384)
    w_in = w_ref[_ROWS["w_in"]:_ROWS["w_in"] + THETA_DIM, :HD]    # (24, 32)
    b_in = w_ref[_ROWS["b_in"]:_ROWS["b_in"] + 1, :HD]            # (1, 32)

    # -------- P_Net_MFP forward (the spec module), both functions batched in M --------
    h = jnp.tanh(jnp.dot(theta_ref[...], w_in,
                         preferred_element_type=jnp.float32) + b_in)
    for l in range(NUM_LAYERS):
        w_h = w_ref[_ROWS[f"w_h{l}"]:_ROWS[f"w_h{l}"] + HD, :HD]
        b_h = w_ref[_ROWS[f"b_h{l}"]:_ROWS[f"b_h{l}"] + 1, :HD]
        h = jnp.tanh(jnp.dot(h, w_h, preferred_element_type=jnp.float32) + b_h)
    params = jnp.dot(h, w_out, preferred_element_type=jnp.float32) + b_out   # (N_F, 384)
    params_ref[...] = params.astype(params_ref.dtype)   # lane-dense (3*128) store; this IS
                                                         # the module's forward output.

    # -------- U_Net: consume generated params from VMEM/registers; both functions
    # -------- batched along the sublane axis (N_F*N_X = 32 rows) --------
    # Sublane-broadcast each function's params row across its N_X query rows, ONCE.
    params_b = jnp.concatenate(
        [jnp.broadcast_to(params[f:f + 1, :], (N_X, PARAMS_PAD)) for f in range(N_F)],
        axis=0)                                                     # (N_F*N_X, 384)

    a = x_ref[...]                                                  # (N_F*N_X, INPUT_DIM)
    n_lin = len(_U_DIMS) - 1
    for i in range(n_lin - 1):                                      # hidden layers (tanh)
        din, dout = _U_DIMS[i], _U_DIMS[i + 1]
        w_off, b_off = _LAYER_OFFS[i]

        def wrow(d, _w=w_off, _do=dout):
            return params_b[:, _w + d * _do:_w + (d + 1) * _do]     # (32, dout) lane slice

        # Split the reduction over din into up to 4 independent partial accumulators
        # (v5e/v6e have no f32 FMA: each MAC is 2 dependent VALU ops otherwise).
        n_part = min(4, din)
        bounds = [(p * din) // n_part for p in range(n_part + 1)]
        partials = []
        for p in range(n_part):
            lo, hi = bounds[p], bounds[p + 1]
            z = a[:, lo:lo + 1] * wrow(lo)
            for d in range(lo + 1, hi):
                z = z + a[:, d:d + 1] * wrow(d)
            partials.append(z)
        while len(partials) > 1:                                    # tree-sum the partials
            nxt = [partials[j] + partials[j + 1]
                   for j in range(0, len(partials) - 1, 2)]
            if len(partials) % 2:
                nxt.append(partials[-1])
            partials = nxt
        a = jnp.tanh(partials[0] + params_b[:, b_off:b_off + dout])  # (32, dout)

    # -------- final linear layer (dout == 1): per-function dot_general contracting the
    # -------- last dims (no materialized a.T), lane-dense (1, N_X) result --------
    din = _U_DIMS[-2]
    w_off, b_off = _LAYER_OFFS[-1]
    pad = jnp.zeros((1, UOUT_PAD - N_X), jnp.float32)               # hoisted out of loop
    rows = []
    for f in range(N_F):
        a_f = a[f * N_X:(f + 1) * N_X, :]                           # (N_X, din)
        w_last = params[f:f + 1, w_off:w_off + din]                 # (1, din)
        b_last = params[f:f + 1, b_off:b_off + 1]                   # (1, 1)
        out = lax.dot_general(w_last, a_f, (((1,), (1,)), ((), ())),
                              preferred_element_type=jnp.float32) + b_last   # (1, N_X)
        rows.append(jnp.concatenate([out, pad], axis=1))            # (1, 128)
    uout_ref[...] = jnp.concatenate(rows, axis=0).astype(uout_ref.dtype)     # (N_F, 128)


# ---------------- wrapper: single fused pallas_call, no grid, 3 input DMAs ----------------
@jax.jit
def s_net_mfp_forward(theta_f, x, w_slab):
    """Returns (params, u):
      params : (N_F, U_NET_SIZE)  P_Net_MFP.forward(theta_f) in canonical nn.Linear order
      u      : (N_F, N_X, 1)      generated per-function MLPs evaluated at x."""
    vmem = pl.BlockSpec(memory_space=pltpu.MemorySpace.VMEM)   # whole arrays resident in VMEM
    x_stacked = x.reshape(N_F * N_X, INPUT_DIM)                # sublane-batch both functions
    params_packed, u_slab = pl.pallas_call(
        fused_kernel,
        out_shape=(jax.ShapeDtypeStruct((N_F, PARAMS_PAD), jnp.float32),
                   jax.ShapeDtypeStruct((N_F, UOUT_PAD), jnp.float32)),
        in_specs=[vmem, vmem, vmem],
        out_specs=(vmem, vmem),
        # No grid: total footprint ~240 KiB; tiling / multi-buffering / vmem_limit_bytes
        # would be pure overhead on v5e/v6e/v7x at this size.
    )(theta_f, x_stacked, w_slab)
    params = params_packed[:, _INV_PERM]                       # back to canonical order
    u = u_slab[:, :N_X][..., None]                             # squeeze lane-dense slab
    return params, u


# ---------------- pure-JAX reference (mirrors the PyTorch spec exactly) ----------------
def reference_forward(theta_f, x, pw):
    h = jnp.tanh(theta_f @ pw["w_in"] + pw["b_in"])
    for l in range(NUM_LAYERS):
        h = jnp.tanh(h @ pw["w_layers"][l] + pw["b_layers"][l])
    params = h @ pw["w_out"] + pw["b_out"]                 # (N_F, 337) == P_Net_MFP.forward
    outs = []
    for f in range(N_F):
        p, a = params[f], x[f]
        off = 0
        for i in range(len(_U_DIMS) - 1):
            din, dout = _U_DIMS[i], _U_DIMS[i + 1]
            w = p[off:off + din * dout].reshape(dout, din)  # torch nn.Linear weight layout
            b = p[off + din * dout: off + din * dout + dout]
            a = a @ w.T + b
            if i < len(_U_DIMS) - 2:
                a = jnp.tanh(a)
            off += din * dout + dout
        outs.append(a)
    return params, jnp.stack(outs, axis=0)                 # (N_F, 337), (N_F, N_X, 1)


# ---------------- deterministic parameter init (torch nn.Linear-style uniform) ----------
def init_p_net_mfp_weights(key):
    def u(k, shape, fan_in):
        bound = 1.0 / np.sqrt(fan_in)
        return jax.random.uniform(k, shape, jnp.float32, -bound, bound)

    ks = jax.random.split(key, 6)
    return {
        "w_in": u(ks[0], (THETA_DIM, HIDDEN_DIM), THETA_DIM),       # = linearIn.weight.T
        "b_in": u(ks[1], (1, HIDDEN_DIM), THETA_DIM),
        "w_layers": u(ks[2], (NUM_LAYERS, HIDDEN_DIM, HIDDEN_DIM), HIDDEN_DIM),
        "b_layers": u(ks[3], (NUM_LAYERS, 1, HIDDEN_DIM), HIDDEN_DIM),
        "w_out": u(ks[4], (HIDDEN_DIM, U_NET_SIZE), HIDDEN_DIM),    # = linearOut.weight.T
        "b_out": u(ks[5], (1, U_NET_SIZE), HIDDEN_DIM),
    }


if __name__ == "__main__":
    key = jax.random.PRNGKey(0)
    k_w, k_xs, k_fs, k_x = jax.random.split(key, 4)

    pw = init_p_net_mfp_weights(k_w)              # canonical (torch-equivalent) weights
    w_slab = pack_p_net_mfp_weights(pw)           # one-time packing, outside the hot path

    x_s = jax.random.normal(k_xs, (N_F, N_S, INPUT_DIM), jnp.float32)
    f_s = jax.random.normal(k_fs, (N_F, N_S, 1), jnp.float32)
    x = jax.random.normal(k_x, (N_F, N_X, INPUT_DIM), jnp.float32)
    # P_Net_MFP input: flattened (x_s, f_s) sensor vector of width (input_dim + 1) * N_s
    theta_f = jnp.concatenate([x_s, f_s], axis=-1).reshape(N_F, THETA_DIM)

    params, u = s_net_mfp_forward(theta_f, x, w_slab)
    params, u = jax.block_until_ready((params, u))

    ref_params, ref_u = reference_forward(theta_f, x, pw)

    assert params.shape == (N_F, U_NET_SIZE)
    assert u.shape == (N_F, N_X, 1)
    # P_Net_MFP forward check (canonical column order)
    p_err = jnp.max(jnp.abs(params - ref_params))
    assert jnp.allclose(params, ref_params, rtol=1e-5, atol=1e-5), \
        f"P_Net_MFP mismatch: max abs err {p_err}"
    # Fused U_Net check
    u_err = jnp.max(jnp.abs(u - ref_u))
    assert jnp.allclose(u, ref_u, rtol=1e-5, atol=1e-5), f"U_Net mismatch: max abs err {u_err}"
    print("KERNEL_OK")
</pallas_src>

<mosaic_0001>
module attributes {stable_mosaic.version = 11 : i64} {
  func.func @fused_kernel(%arg0: memref<2x24xf32, #tpu.memory_space<vmem>>, %arg1: memref<32x2xf32, #tpu.memory_space<vmem>>, %arg2: memref<152x384xf32, #tpu.memory_space<vmem>>, %arg3: memref<2x384xf32, #tpu.memory_space<vmem>>, %arg4: memref<2x128xf32, #tpu.memory_space<vmem>>) attributes {dimension_semantics = [], scalar_prefetch = 0 : i64, scratch_operands = 0 : i64, tpu.core_type = #tpu.core_type<tc>} {
    %c0 = arith.constant 0 : index
    %c0_0 = arith.constant 0 : index
    %0 = vector.load %arg2[%c0, %c0_0] : memref<152x384xf32, #tpu.memory_space<vmem>>, vector<32x384xf32>
    %c32 = arith.constant 32 : index
    %c0_1 = arith.constant 0 : index
    %1 = vector.load %arg2[%c32, %c0_1] : memref<152x384xf32, #tpu.memory_space<vmem>>, vector<1x384xf32>
    %c40 = arith.constant 40 : index
    %c0_2 = arith.constant 0 : index
    %2 = vector.load %arg2[%c40, %c0_2] : memref<152x384xf32, #tpu.memory_space<vmem>>, vector<24x32xf32>
    %c64 = arith.constant 64 : index
    %c0_3 = arith.constant 0 : index
    %3 = vector.load %arg2[%c64, %c0_3] : memref<152x384xf32, #tpu.memory_space<vmem>>, vector<1x32xf32>
    %c0_4 = arith.constant 0 : index
    %c0_5 = arith.constant 0 : index
    %4 = vector.load %arg0[%c0_4, %c0_5] : memref<2x24xf32, #tpu.memory_space<vmem>>, vector<2x24xf32>
    %cst = arith.constant dense<0.000000e+00> : vector<2x32xf32>
    %5 = tpu.matmul %4, %2, %cst {dimension_numbers = #tpu.dot_dimension_numbers<[1], [0], [0], [1], [0, 0, 1, 1], [], []>} : vector<2x24xf32>, vector<24x32xf32>, vector<2x32xf32> -> vector<2x32xf32>
    %6 = vector.broadcast %3 : vector<1x32xf32> to vector<2x32xf32>
    %7 = arith.addf %5, %6 : vector<2x32xf32>
    %8 = math.tanh %7 : vector<2x32xf32>
    %c72 = arith.constant 72 : index
    %c0_6 = arith.constant 0 : index
    %9 = vector.load %arg2[%c72, %c0_6] : memref<152x384xf32, #tpu.memory_space<vmem>>, vector<32x32xf32>
    %c104 = arith.constant 104 : index
    %c0_7 = arith.constant 0 : index
    %10 = vector.load %arg2[%c104, %c0_7] : memref<152x384xf32, #tpu.memory_space<vmem>>, vector<1x32xf32>
    %cst_8 = arith.constant dense<0.000000e+00> : vector<2x32xf32>
    %11 = tpu.matmul %8, %9, %cst_8 {dimension_numbers = #tpu.dot_dimension_numbers<[1], [0], [0], [1], [0, 0, 1, 1], [], []>} : vector<2x32xf32>, vector<32x32xf32>, vector<2x32xf32> -> vector<2x32xf32>
    %12 = vector.broadcast %10 : vector<1x32xf32> to vector<2x32xf32>
    %13 = arith.addf %11, %12 : vector<2x32xf32>
    %14 = math.tanh %13 : vector<2x32xf32>
    %c112 = arith.constant 112 : index
    %c0_9 = arith.constant 0 : index
    %15 = vector.load %arg2[%c112, %c0_9] : memref<152x384xf32, #tpu.memory_space<vmem>>, vector<32x32xf32>
    %c144 = arith.constant 144 : index
    %c0_10 = arith.constant 0 : index
    %16 = vector.load %arg2[%c144, %c0_10] : memref<152x384xf32, #tpu.memory_space<vmem>>, vector<1x32xf32>
    %cst_11 = arith.constant dense<0.000000e+00> : vector<2x32xf32>
    %17 = tpu.matmul %14, %15, %cst_11 {dimension_numbers = #tpu.dot_dimension_numbers<[1], [0], [0], [1], [0, 0, 1, 1], [], []>} : vector<2x32xf32>, vector<32x32xf32>, vector<2x32xf32> -> vector<2x32xf32>
    %18 = vector.broadcast %16 : vector<1x32xf32> to vector<2x32xf32>
    %19 = arith.addf %17, %18 : vector<2x32xf32>
    %20 = math.tanh %19 : vector<2x32xf32>
    %cst_12 = arith.constant dense<0.000000e+00> : vector<2x384xf32>
    %21 = tpu.matmul %20, %0, %cst_12 {dimension_numbers = #tpu.dot_dimension_numbers<[1], [0], [0], [1], [0, 0, 1, 1], [], []>} : vector<2x32xf32>, vector<32x384xf32>, vector<2x384xf32> -> vector<2x384xf32>
    %22 = vector.broadcast %1 : vector<1x384xf32> to vector<2x384xf32>
    %23 = arith.addf %21, %22 : vector<2x384xf32>
    %c0_13 = arith.constant 0 : index
    %c0_14 = arith.constant 0 : index
    %24 = vector.load %arg3[%c0_13, %c0_14] : memref<2x384xf32, #tpu.memory_space<vmem>>, vector<2x384xf32>
    tpu.vector_store %arg3[%c0_13, %c0_14], %23 {strides = array<i32>} : memref<2x384xf32, #tpu.memory_space<vmem>>, vector<2x384xf32>,
    %25 = vector.extract_strided_slice %23 {offsets = [0, 0], sizes = [1, 384], strides = [1, 1]} : vector<2x384xf32> to vector<1x384xf32>
    %26 = vector.shape_cast %25 : vector<1x384xf32> to vector<1x384xf32>
    %27 = vector.broadcast %26 : vector<1x384xf32> to vector<16x384xf32>
    %28 = vector.extract_strided_slice %23 {offsets = [1, 0], sizes = [1, 384], strides = [1, 1]} : vector<2x384xf32> to vector<1x384xf32>
    %29 = vector.shape_cast %28 : vector<1x384xf32> to vector<1x384xf32>
    %30 = vector.broadcast %29 : vector<1x384xf32> to vector<16x384xf32>
    %31 = tpu.concatenate %27, %30 in 0 : vector<16x384xf32>, vector<16x384xf32> -> vector<32x384xf32>
    %c0_15 = arith.constant 0 : index
    %c0_16 = arith.constant 0 : index
    %32 = vector.load %arg1[%c0_15, %c0_16] : memref<32x2xf32, #tpu.memory_space<vmem>>, vector<32x2xf32>
    %33 = vector.extract_strided_slice %32 {offsets = [0, 0], sizes = [32, 1], strides = [1, 1]} : vector<32x2xf32> to vector<32x1xf32>
    %34 = vector.extract_strided_slice %31 {offsets = [0, 0], sizes = [32, 16], strides = [1, 1]} : vector<32x384xf32> to vector<32x16xf32>
    %35 = vector.broadcast %33 : vector<32x1xf32> to vector<32x16xf32>
    %36 = arith.mulf %35, %34 : vector<32x16xf32>
    %37 = vector.extract_strided_slice %32 {offsets = [0, 1], sizes = [32, 1], strides = [1, 1]} : vector<32x2xf32> to vector<32x1xf32>
    %38 = vector.extract_strided_slice %31 {offsets = [0, 16], sizes = [32, 16], strides = [1, 1]} : vector<32x384xf32> to vector<32x16xf32>
    %39 = vector.broadcast %37 : vector<32x1xf32> to vector<32x16xf32>
    %40 = arith.mulf %39, %38 : vector<32x16xf32>
    %41 = arith.addf %36, %40 : vector<32x16xf32>
    %42 = vector.extract_strided_slice %31 {offsets = [0, 32], sizes = [32, 16], strides = [1, 1]} : vector<32x384xf32> to vector<32x16xf32>
    %43 = arith.addf %41, %42 : vector<32x16xf32>
    %44 = math.tanh %43 : vector<32x16xf32>
    %45 = vector.extract_strided_slice %44 {offsets = [0, 0], sizes = [32, 1], strides = [1, 1]} : vector<32x16xf32> to vector<32x1xf32>
    %46 = vector.extract_strided_slice %31 {offsets = [0, 48], sizes = [32, 16], strides = [1, 1]} : vector<32x384xf32> to vector<32x16xf32>
    %47 = vector.broadcast %45 : vector<32x1xf32> to vector<32x16xf32>
    %48 = arith.mulf %47, %46 : vector<32x16xf32>
    %49 = vector.extract_strided_slice %44 {offsets = [0, 1], sizes = [32, 1], strides = [1, 1]} : vector<32x16xf32> to vector<32x1xf32>
    %50 = vector.extract_strided_slice %31 {offsets = [0, 64], sizes = [32, 16], strides = [1, 1]} : vector<32x384xf32> to vector<32x16xf32>
    %51 = vector.broadcast %49 : vector<32x1xf32> to vector<32x16xf32>
    %52 = arith.mulf %51, %50 : vector<32x16xf32>
    %53 = arith.addf %48, %52 : vector<32x16xf32>
    %54 = vector.extract_strided_slice %44 {offsets = [0, 2], sizes = [32, 1], strides = [1, 1]} : vector<32x16xf32> to vector<32x1xf32>
    %55 = vector.extract_strided_slice %31 {offsets = [0, 80], sizes = [32, 16], strides = [1, 1]} : vector<32x384xf32> to vector<32x16xf32>
    %56 = vector.broadcast %54 : vector<32x1xf32> to vector<32x16xf32>
    %57 = arith.mulf %56, %55 : vector<32x16xf32>
    %58 = arith.addf %53, %57 : vector<32x16xf32>
    %59 = vector.extract_strided_slice %44 {offsets = [0, 3], sizes = [32, 1], strides = [1, 1]} : vector<32x16xf32> to vector<32x1xf32>
    %60 = vector.extract_strided_slice %31 {offsets = [0, 96], sizes = [32, 16], strides = [1, 1]} : vector<32x384xf32> to vector<32x16xf32>
    %61 = vector.broadcast %59 : vector<32x1xf32> to vector<32x16xf32>
    %62 = arith.mulf %61, %60 : vector<32x16xf32>
    %63 = arith.addf %58, %62 : vector<32x16xf32>
    %64 = vector.extract_strided_slice %44 {offsets = [0, 4], sizes = [32, 1], strides = [1, 1]} : vector<32x16xf32> to vector<32x1xf32>
    %65 = vector.extract_strided_slice %31 {offsets = [0, 112], sizes = [32, 16], strides = [1, 1]} : vector<32x384xf32> to vector<32x16xf32>
    %66 = vector.broadcast %64 : vector<32x1xf32> to vector<32x16xf32>
    %67 = arith.mulf %66, %65 : vector<32x16xf32>
    %68 = vector.extract_strided_slice %44 {offsets = [0, 5], sizes = [32, 1], strides = [1, 1]} : vector<32x16xf32> to vector<32x1xf32>
    %69 = vector.extract_strided_slice %31 {offsets = [0, 128], sizes = [32, 16], strides = [1, 1]} : vector<32x384xf32> to vector<32x16xf32>
    %70 = vector.broadcast %68 : vector<32x1xf32> to vector<32x16xf32>
    %71 = arith.mulf %70, %69 : vector<32x16xf32>
    %72 = arith.addf %67, %71 : vector<32x16xf32>
    %73 = vector.extract_strided_slice %44 {offsets = [0, 6], sizes = [32, 1], strides = [1, 1]} : vector<32x16xf32> to vector<32x1xf32>
    %74 = vector.extract_strided_slice %31 {offsets = [0, 144], sizes = [32, 16], strides = [1, 1]} : vector<32x384xf32> to vector<32x16xf32>
    %75 = vector.broadcast %73 : vector<32x1xf32> to vector<32x16xf32>
    %76 = arith.mulf %75, %74 : vector<32x16xf32>
    %77 = arith.addf %72, %76 : vector<32x16xf32>
    %78 = vector.extract_strided_slice %44 {offsets = [0, 7], sizes = [32, 1], strides = [1, 1]} : vector<32x16xf32> to vector<32x1xf32>
    %79 = vector.extract_strided_slice %31 {offsets = [0, 160], sizes = [32, 16], strides = [1, 1]} : vector<32x384xf32> to vector<32x16xf32>
    %80 = vector.broadcast %78 : vector<32x1xf32> to vector<32x16xf32>
    %81 = arith.mulf %80, %79 : vector<32x16xf32>
    %82 = arith.addf %77, %81 : vector<32x16xf32>
    %83 = vector.extract_strided_slice %44 {offsets = [0, 8], sizes = [32, 1], strides = [1, 1]} : vector<32x16xf32> to vector<32x1xf32>
    %84 = vector.extract_strided_slice %31 {offsets = [0, 176], sizes = [32, 16], strides = [1, 1]} : vector<32x384xf32> to vector<32x16xf32>
    %85 = vector.broadcast %83 : vector<32x1xf32> to vector<32x16xf32>
    %86 = arith.mulf %85, %84 : vector<32x16xf32>
    %87 = vector.extract_strided_slice %44 {offsets = [0, 9], sizes = [32, 1], strides = [1, 1]} : vector<32x16xf32> to vector<32x1xf32>
    %88 = vector.extract_strided_slice %31 {offsets = [0, 192], sizes = [32, 16], strides = [1, 1]} : vector<32x384xf32> to vector<32x16xf32>
    %89 = vector.broadcast %87 : vector<32x1xf32> to vector<32x16xf32>
    %90 = arith.mulf %89, %88 : vector<32x16xf32>
    %91 = arith.addf %86, %90 : vector<32x16xf32>
    %92 = vector.extract_strided_slice %44 {offsets = [0, 10], sizes = [32, 1], strides = [1, 1]} : vector<32x16xf32> to vector<32x1xf32>
    %93 = vector.extract_strided_slice %31 {offsets = [0, 208], sizes = [32, 16], strides = [1, 1]} : vector<32x384xf32> to vector<32x16xf32>
    %94 = vector.broadcast %92 : vector<32x1xf32> to vector<32x16xf32>
    %95 = arith.mulf %94, %93 : vector<32x16xf32>
    %96 = arith.addf %91, %95 : vector<32x16xf32>
    %97 = vector.extract_strided_slice %44 {offsets = [0, 11], sizes = [32, 1], strides = [1, 1]} : vector<32x16xf32> to vector<32x1xf32>
    %98 = vector.extract_strided_slice %31 {offsets = [0, 224], sizes = [32, 16], strides = [1, 1]} : vector<32x384xf32> to vector<32x16xf32>
    %99 = vector.broadcast %97 : vector<32x1xf32> to vector<32x16xf32>
    %100 = arith.mulf %99, %98 : vector<32x16xf32>
    %101 = arith.addf %96, %100 : vector<32x16xf32>
    %102 = vector.extract_strided_slice %44 {offsets = [0, 12], sizes = [32, 1], strides = [1, 1]} : vector<32x16xf32> to vector<32x1xf32>
    %103 = vector.extract_strided_slice %31 {offsets = [0, 240], sizes = [32, 16], strides = [1, 1]} : vector<32x384xf32> to vector<32x16xf32>
    %104 = vector.broadcast %102 : vector<32x1xf32> to vector<32x16xf32>
    %105 = arith.mulf %104, %103 : vector<32x16xf32>
    %106 = vector.extract_strided_slice %44 {offsets = [0, 13], sizes = [32, 1], strides = [1, 1]} : vector<32x16xf32> to vector<32x1xf32>
    %107 = vector.extract_strided_slice %31 {offsets = [0, 256], sizes = [32, 16], strides = [1, 1]} : vector<32x384xf32> to vector<32x16xf32>
    %108 = vector.broadcast %106 : vector<32x1xf32> to vector<32x16xf32>
    %109 = arith.mulf %108, %107 : vector<32x16xf32>
    %110 = arith.addf %105, %109 : vector<32x16xf32>
    %111 = vector.extract_strided_slice %44 {offsets = [0, 14], sizes = [32, 1], strides = [1, 1]} : vector<32x16xf32> to vector<32x1xf32>
    %112 = vector.extract_strided_slice %31 {offsets = [0, 272], sizes = [32, 16], strides = [1, 1]} : vector<32x384xf32> to vector<32x16xf32>
    %113 = vector.broadcast %111 : vector<32x1xf32> to vector<32x16xf32>
    %114 = arith.mulf %113, %112 : vector<32x16xf32>
    %115 = arith.addf %110, %114 : vector<32x16xf32>
    %116 = vector.extract_strided_slice %44 {offsets = [0, 15], sizes = [32, 1], strides = [1, 1]} : vector<32x16xf32> to vector<32x1xf32>
    %117 = vector.extract_strided_slice %31 {offsets = [0, 288], sizes = [32, 16], strides = [1, 1]} : vector<32x384xf32> to vector<32x16xf32>
    %118 = vector.broadcast %116 : vector<32x1xf32> to vector<32x16xf32>
    %119 = arith.mulf %118, %117 : vector<32x16xf32>
    %120 = arith.addf %115, %119 : vector<32x16xf32>
    %121 = arith.addf %63, %82 : vector<32x16xf32>
    %122 = arith.addf %101, %120 : vector<32x16xf32>
    %123 = arith.addf %121, %122 : vector<32x16xf32>
    %124 = vector.extract_strided_slice %31 {offsets = [0, 304], sizes = [32, 16], strides = [1, 1]} : vector<32x384xf32> to vector<32x16xf32>
    %125 = arith.addf %123, %124 : vector<32x16xf32>
    %126 = math.tanh %125 : vector<32x16xf32>
    %cst_17 = arith.constant 0.000000e+00 : f32
    %127 = vector.broadcast %cst_17 : f32 to vector<1x112xf32>
    %128 = vector.extract_strided_slice %126 {offsets = [0, 0], sizes = [16, 16], strides = [1, 1]} : vector<32x16xf32> to vector<16x16xf32>
    %129 = vector.extract_strided_slice %23 {offsets = [0, 320], sizes = [1, 16], strides = [1, 1]} : vector<2x384xf32> to vector<1x16xf32>
    %130 = vector.extract_strided_slice %23 {offsets = [0, 336], sizes = [1, 1], strides = [1, 1]} : vector<2x384xf32> to vector<1x1xf32>
    %cst_18 = arith.constant dense<0.000000e+00> : vector<1x16xf32>
    %131 = tpu.matmul %129, %128, %cst_18 {dimension_numbers = #tpu.dot_dimension_numbers<[1], [1], [0], [0], [0, 0, 1, 0], [], []>} : vector<1x16xf32>, vector<16x16xf32>, vector<1x16xf32> -> vector<1x16xf32>
    %132 = vector.broadcast %130 : vector<1x1xf32> to vector<1x16xf32>
    %133 = arith.addf %131, %132 : vector<1x16xf32>
    %134 = tpu.concatenate %133, %127 in 1 : vector<1x16xf32>, vector<1x112xf32> -> vector<1x128xf32>
    %135 = vector.extract_strided_slice %126 {offsets = [16, 0], sizes = [16, 16], strides = [1, 1]} : vector<32x16xf32> to vector<16x16xf32>
    %136 = vector.extract_strided_slice %23 {offsets = [1, 320], sizes = [1, 16], strides = [1, 1]} : vector<2x384xf32> to vector<1x16xf32>
    %137 = vector.extract_strided_slice %23 {offsets = [1, 336], sizes = [1, 1], strides = [1, 1]} : vector<2x384xf32> to vector<1x1xf32>
    %cst_19 = arith.constant dense<0.000000e+00> : vector<1x16xf32>
    %138 = tpu.matmul %136, %135, %cst_19 {dimension_numbers = #tpu.dot_dimension_numbers<[1], [1], [0], [0], [0, 0, 1, 0], [], []>} : vector<1x16xf32>, vector<16x16xf32>, vector<1x16xf32> -> vector<1x16xf32>
    %139 = vector.broadcast %137 : vector<1x1xf32> to vector<1x16xf32>
    %140 = arith.addf %138, %139 : vector<1x16xf32>
    %141 = tpu.concatenate %140, %127 in 1 : vector<1x16xf32>, vector<1x112xf32> -> vector<1x128xf32>
    %142 = tpu.concatenate %134, %141 in 0 : vector<1x128xf32>, vector<1x128xf32> -> vector<2x128xf32>
    %c0_20 = arith.constant 0 : index
    %c0_21 = arith.constant 0 : index
    %143 = vector.load %arg4[%c0_20, %c0_21] : memref<2x128xf32, #tpu.memory_space<vmem>>, vector<2x128xf32>
    tpu.vector_store %arg4[%c0_20, %c0_21], %142 {strides = array<i32>} : memref<2x128xf32, #tpu.memory_space<vmem>>, vector<2x128xf32>,
    return
  }
}

</mosaic_0001>

<bundles_post_ra>
// kernel: s_net_mfp_forward.1
= control target key start
LH: loop header
LB: loop body
LE: loop exit
PB: predicated region body
PF: predicated region fallthrough
CT: control target
= control target key end

     0   :  { %10 = vsyncpa [#allocation3], 0  ;;  %s1648_s0 = inlined_call_operand.vmem [shape: f32[2,24], index: 0, kind: input, shape index: {}]   ;;  %s1649_s1 = inlined_call_operand.vmem [shape: f32[32,2], index: 1, kind: input, shape index: {}]   ;;  %s1650_s2 = inlined_call_operand.hbm [shape: f32[152,384], index: 2, kind: input, shape index: {}]   ;;  %s1651_s3 = inlined_call_operand.vmem [shape: f32[2,384], index: 3, kind: output, shape index: {0}]   ;;  %s1652_s4 = inlined_call_operand.hbm [shape: f32[2,128], index: 4, kind: output, shape index: {1}]  }
   0x1   :  { %11 = vsyncpa [#allocation4], 0  ;;  %s20_s17 = sshll.u32 %s1650_s2, 4  ;;  %s1191_s18 = smov [#allocation2]   ;;  %s21_s17 = int_to_ptr.hbm [resolvable:$true] %s20_s17 }
   0x2   :  { %s22_s19 = sshll.u32 %s1191_s18, 4  ;;  %s1192_s20 = smov 384   ;;  %s23_s19 = int_to_ptr.vmem [resolvable:$true] %s22_s19 }
   0x3   :  { %s1193_s21 = smov 24  }
   0x4   :  { %28 = dma.hbm_to_vmem [thread:$0]  %s21_s17, 7296, %s23_s19, [#allocation3], %s1192_s20, %s1192_s20, %s1193_s21  }
   0x5   :  { %1187 = dma.done.wait [#allocation3], 7296  }
   0x6   :  { %1188 = vsyncadd [#allocation3], 4294960000  ;;  %v49_v0 = vld [vmem:[#allocation2 + $0xa8] sm:$0xff]  ;;  %v48_v1 = vld [vmem:[#allocation2 + $0x90] sm:$0xff]  ;;  %vm52_vm0 = vcmask 195584   ;;  %vm82_vm1 = vcmask 261120  }
   0x7   :  { %69 = vmatpush.msra.mxu0 %v49_v0  ;;  %v47_v2 = vld [vmem:[#allocation2 + $0x78] sm:$0xff]  ;;  %v51_v3 = vld [vmem:[%s1648_s0] sm:$0x3]  ;;  %v79_v5 = vld [vmem:[#allocation2 + $0x108] sm:$0xff]  ;;  %v1194_v33 = vmov 1   ;;  %v1195_v34 = vmov 0  }
   0x8   :  { %v80_v4 = vld [vmem:[#allocation2 + $0x120] sm:$0xff]  ;;  %v78_v6 = vld [vmem:[#allocation2 + $0xf0] sm:$0xff]  ;;  %v77_v7 = vld [vmem:[#allocation2 + $0xd8] sm:$0xff]  ;;  %1067 = vset.pattern.permute.xlu0 %v1194_v33  ;;  %1065 = vset.pattern.permute.xlu1 %v1195_v34  ;;  %vm211_vm2 = vcmask 1041408   ;;  %vm213_vm3 = vcmask 1043456   ;;  %s1196_s5 = smov 96  }
   0x9   :  { %70 = vmatpush.msra.mxu0 %v48_v1  ;;  %98 = vmatpush.msra.mxu1 %v80_v4  ;;  %v50_v8 = vld [vmem:[#allocation2 + $0xc0] ss:$0 sm:$0xff]  ;;  %v110_v12 = vld [vmem:[#allocation2 + $0x198] sm:$0xff]  ;;  %v108_v14 = vld [vmem:[#allocation2 + $0x168] sm:$0xff]  ;;  %s1197_s6 = smov 112   ;;  %s1213_s7 = smov 64  }
   0xa   :  { %127 = vmatpush.msra.mxu2 %v110_v12  ;;  %v109_v13 = vld [vmem:[#allocation2 + $0x180] sm:$0xff]  ;;  %v107_v15 = vld [vmem:[#allocation2 + $0x150] sm:$0xff]  ;;  %v81_v16 = vld [vmem:[#allocation2 + $0x138] ss:$0 sm:$0xff]  ;;  %1066 = vset.pattern.permute.xlu2 %v1194_v33  ;;  %vm935_vm4 = vcmask 130048   ;;  %s1215_s8 = smov [#allocation5]  }
   0xb   :  { %71 = vmatpush.msra.mxu0 %v47_v2  ;;  %99 = vmatpush.msra.mxu1 %v79_v5  ;;  %v42_v20 = vld [vmem:[#allocation2 + $0x48] sm:$0xff]  ;;  %v43_v21 = vld [vmem:[#allocation2 + $0x50] sm:$0xff]  ;;  %v44_v22 = vld [vmem:[#allocation2 + $0x58] sm:$0xff]  ;;  %s1014_s9 = sshll.u32 %s1215_s8, 4  ;;  %s1016_s12 = sshll.u32 %s1652_s4, 4  ;;  %vm1004_vm5 = vcmask 1040384   ;;  %s1015_s9 = int_to_ptr.vmem [resolvable:$true] %s1014_s9  ;;  %s1017_s12 = int_to_ptr.hbm [resolvable:$true] %s1016_s12 }
   0xc   :  { %1028 = vmatmul.msk.f32.vlgmr.msra.gmra.mxu0 %vm52_vm0, %v51_v3  ;;  %128 = vmatpush.msra.mxu2 %v109_v13  ;;  %v39_v23 = vld [vmem:[#allocation2 + $0x30] sm:$0xff]  ;;  %v40_v24 = vld [vmem:[#allocation2 + $0x38] sm:$0xff]  ;;  %v41_v25 = vld [vmem:[#allocation2 + $0x40] sm:$0xff] }
   0xd   :  { %100 = vmatpush.msra.mxu1 %v78_v6  ;;  %158 = vmatpush.msra.mxu3 %v42_v20  ;;  %v36_v26 = vld [vmem:[#allocation2 + $0x18] sm:$0xff]  ;;  %v37_v27 = vld [vmem:[#allocation2 + $0x20] sm:$0xff]  ;;  %v38_v28 = vld [vmem:[#allocation2 + $0x28] sm:$0xff] }
   0xe   :  { %129 = vmatpush.msra.mxu2 %v108_v14  ;;  %178 = vmatpush.msrb.mxu0 %v43_v21  ;;  %v33_v29 = vld [vmem:[#allocation2] sm:$0xff]  ;;  %v34_v30 = vld [vmem:[#allocation2 + $0x8] sm:$0xff]  ;;  %v35_v31 = vld [vmem:[#allocation2 + $0x10] sm:$0xff] }
   0xf   :  { %101 = vmatpush.msra.mxu1 %v77_v7  ;;  %159 = vmatpush.msra.mxu3 %v39_v23  ;;  %v227_v32 = vld [vmem:[%s1649_s1 + $0x10] sm:$0xff]  ;;  %v225_v35 = vld [vmem:[%s1649_s1] sm:$0xff]  ;;  %v228_v36 = vld [vmem:[%s1649_s1 + $0x18] sm:$0xff] }
  0x10   :  { %130 = vmatpush.msra.mxu2 %v107_v15  ;;  %179 = vmatpush.msrb.mxu0 %v40_v24  ;;  %v226_v37 = vld [vmem:[%s1649_s1 + $0x8] sm:$0xff]  ;;  %v111_v38 = vld [vmem:[#allocation2 + $0x1b0] ss:$0 sm:$0xff] }
  0x11   :  { %198 = vmatpush.msrb.mxu1 %v44_v22  ;;  %160 = vmatpush.msra.mxu3 %v36_v26  ;;  %v46_v43 = vld [vmem:[#allocation2 + $0x60] ss:$8 sm:$0x7] }
  0x12   :  { %180 = vmatpush.msrb.mxu0 %v37_v27  ;;  %262 = vperm.xlu0 %1067, %v227_v32   ;;  %v138_v45 = vperm.slane %v46_v43, 1  ;;  %v139_v47 = vperm.slane %v46_v43, 2  ;;  %v137_v50 = vperm.slane %v46_v43, 0 }
  0x13   :  { %199 = vmatpush.msrb.mxu1 %v41_v25  ;;  %161 = vmatpush.msra.mxu3 %v33_v29  ;;  %v1199_v29 = vmov 3  }
  0x14   :  { %181 = vmatpush.msrb.mxu0 %v34_v30  ;;  %241 = vperm.xlu1 %1065, %v227_v32   ;;  %v1200_v30 = vmov 4   ;;  %v1202_v32 = vmov 6  }
  0x15   :  { %200 = vmatpush.msrb.mxu1 %v38_v28  ;;  %254 = vperm.xlu2 %1066, %v225_v35   ;;  %v1198_v28 = vmov 2  }
  0x17   :  { %201 = vmatpush.msrb.mxu1 %v35_v31  ;;  %v1201_v31 = vmov 5  }
  0x1a   :  { %1068 = vset.pattern.permute.xlu0 %v1195_v34 }
  0x1b   :  { %231 = vperm.xlu0 %1068, %v225_v35  }
  0x1c   :  { %246 = vperm.xlu1 %1065, %v228_v36  }
  0x1d   :  { %258 = vperm.xlu2 %1066, %v226_v37  }
  0x23   :  { %236 = vperm.xlu0 %1068, %v226_v37  }
  0x24   :  { %1069 = vset.pattern.permute.xlu1 %v1194_v33 }
  0x25   :  { %266 = vperm.xlu1 %1069, %v228_v36   ;;  %1071 = vset.pattern.permute.xlu2 %v1195_v34  ;;  %v1205_v36 = vmov 15  }
  0x2d   :  { %1070 = vset.pattern.permute.xlu1 %v1195_v34  ;;  %v1204_v34 = vmov 14  }
  0x6f   :  { %v255_v52 = vpop.permute.xlu2 %254 }
  0x77   :  { %v259_v63 = vpop.permute.xlu2 %258 }
  0x84   :  { %v263_v2 = vpop.permute.xlu0 %262 }
  0x86   :  { %v242_v42 = vpop.permute.xlu1 %241 }
  0x89   :  { %v73_v9 = vpop.f32.mrf.mxu0 }
  0x8a   :  { %v74_v10 = vadd.f32 %v73_v9, %v50_v8 }
  0x8c   :  { %1117 = vtanh.f32 %v74_v10 }
  0x8d   :  { %v232_v6 = vpop.permute.xlu0 %231 }
  0x8e   :  { %v247_v44 = vpop.permute.xlu1 %246 }
  0x92   :  { %v1118_v11 = vpop.eup %1117 }
  0x93   :  { %1029 = vmatmul.msk.f32.vlgmr.msra.gmra.mxu1 %vm82_vm1, %v1118_v11 }
  0x95   :  { %v237_v10 = vpop.permute.xlu0 %236 }
  0x97   :  { %v267_v57 = vpop.permute.xlu1 %266 }
 0x110   :  { %v103_v17 = vpop.f32.mrf.mxu1 }
 0x111   :  { %v104_v18 = vadd.f32 %v103_v17, %v81_v16 }
 0x113   :  { %1119 = vtanh.f32 %v104_v18 }
 0x119   :  { %v1120_v19 = vpop.eup %1119 }
 0x11a   :  { %1030 = vmatmul.msk.f32.vlgmr.msra.gmra.mxu2 %vm82_vm1, %v1120_v19 }
 0x19d   :  { %v132_v39 = vpop.f32.mrf.mxu2 }
 0x19e   :  { %v133_v40 = vadd.f32 %v132_v39, %v111_v38  ;;  %v1206_v38 = vmov 13   ;;  %v1207_v39 = vmov 10  }
 0x1a0   :  { %1121 = vtanh.f32 %v133_v40 }
 0x1a6   :  { %v1122_v41 = vpop.eup %1121 }
 0x1a7   :  { %1031 = vmatmul.msk.f32.vlgmr.msra.gmra.mxu3 %vm82_vm1, %v1122_v41  ;;  %1032 = vmatmul.msk.f32.vlgmr.msrb.gmra.mxu0 %vm82_vm1, %v1122_v41 }
 0x1a8   :  { %1033 = vmatmul.msk.f32.vlgmr.msrb.gmra.mxu1 %vm82_vm1, %v1122_v41  ;;  %v1208_v41 = vmov 11  }
 0x224   :  { %v183_v46 = vpop.f32.mrf.mxu0 }
 0x225   :  { %v203_v48 = vpop.f32.mrf.mxu1  ;;  %v1267_v49 = vadd.f32 %v183_v46, %v138_v45 }
 0x226   :  { %v1269_v51 = vadd.f32 %v203_v48, %v139_v47 }
 0x227   :  { %v209_v54 = vrot.slane %v1267_v49, 6 }
 0x228   :  { %v210_v56 = vrot.slane %v1269_v51, 4 }
 0x22a   :  { %v163_v53 = vpop.f32.mrf.mxu3 }
 0x22b   :  { %v164_v55 = vadd.f32 %v163_v53, %v137_v50  ;;  %v1210_v53 = vmov 8  }
 0x22d   :  { %v212_v58 = vsel %vm211_vm2, %v164_v55, %v209_v54  ;;  %v1273_v59 = vperm.slane %v164_v55, 0  ;;  %v1275_v60 = vperm.slane %v164_v55, 1 }
 0x22e   :  { %v214_v61 = vsel %vm213_vm3, %v212_v58, %v210_v56 }
 0x22f   :  { %216 = vst [vmem:[%s1651_s3] sm:$0x3f] %v214_v61  ;;  %v272_v62 = vmul.f32 %v267_v57, %v1275_v60  ;;  %295 = vrot.lane.b32.xlu2 %v1275_v60, %s1196_s5  ;;  %293 = vrot.lane.b32.xlu1 %v1273_v59, %s1196_s5  ;;  %v270_v0 = vmul.f32 %v259_v63, %v1273_v59  ;;  %s1212_s3 = smov 80  }
 0x230   :  { %v269_v1 = vmul.f32 %v255_v52, %v1273_v59  ;;  %v271_v3 = vmul.f32 %v263_v2, %v1275_v60  ;;  %v251_v7 = vmul.f32 %v242_v42, %v1275_v60  ;;  %v249_v12 = vmul.f32 %v232_v6, %v1273_v59 }
 0x231   :  { %283 = vrot.lane.b32.xlu0 %v272_v62, %s1197_s6  ;;  %v252_v18 = vmul.f32 %v247_v44, %v1275_v60  ;;  %v250_v20 = vmul.f32 %v237_v10, %v1273_v59  ;;  %v1209_v44 = vmov 9  }
 0x237   :  { %279 = vrot.lane.b32.xlu1 %v270_v0, %s1197_s6  ;;  %277 = vrot.lane.b32.xlu2 %v269_v1, %s1197_s6  ;;  %v1211_v1 = vmov 12  }
 0x23f   :  { %281 = vrot.lane.b32.xlu2 %v271_v3, %s1197_s6 }
 0x289   :  { %v296_v4 = vpop.permute.xlu2 %295 }
 0x291   :  { %v278_v5 = vpop.permute.xlu2 %277 }
 0x292   :  { %v289_v13 = vadd.f32 %v278_v5, %v249_v12 }
 0x299   :  { %v282_v8 = vpop.permute.xlu2 %281 }
 0x29a   :  { %v291_v9 = vadd.f32 %v282_v8, %v251_v7 }
 0x29c   :  { %v301_v11 = vadd.f32 %v296_v4, %v291_v9 }
 0x29e   :  { %1123 = vtanh.f32 %v301_v11 }
 0x2a1   :  { %v294_v14 = vpop.permute.xlu1 %293 }
 0x2a2   :  { %v299_v15 = vadd.f32 %v294_v14, %v289_v13  ;;  %v1413_v13 = vperm.slane %v1267_v49, 1 }
 0x2a3   :  { %v284_v17 = vpop.permute.xlu0 %283 }
 0x2a4   :  { %v1294_v16 = vpop.eup %1123  ;;  %1125 = vtanh.f32 %v299_v15  ;;  %v292_v19 = vadd.f32 %v284_v17, %v252_v18 }
 0x2a5   :  { %319 = vperm.xlu2 %1071, %v1294_v16  }
 0x2a6   :  { %v302_v24 = vadd.f32 %v296_v4, %v292_v19 }
 0x2a9   :  { %v280_v21 = vpop.permute.xlu1 %279 }
 0x2aa   :  { %v1299_v22 = vpop.eup %1125  ;;  %v290_v23 = vadd.f32 %v280_v21, %v250_v20 }
 0x2ab   :  { %309 = vperm.xlu0 %1068, %v1299_v22  }
 0x2ac   :  { %v300_v25 = vadd.f32 %v294_v14, %v290_v23 }
 0x2ad   :  { %1072 = vset.pattern.permute.xlu2 %v1194_v33 }
 0x2ae   :  { %1127 = vtanh.f32 %v300_v25  ;;  %332 = vperm.xlu2 %1072, %v1299_v22  }
 0x2af   :  { %1129 = vtanh.f32 %v302_v24 }
 0x2b3   :  { %1073 = vset.pattern.permute.xlu0 %v1194_v33 }
 0x2b4   :  { %v1305_v26 = vpop.eup %1127 }
 0x2b5   :  { %v1307_v27 = vpop.eup %1129  ;;  %314 = vperm.xlu1 %1070, %v1305_v26   ;;  %336 = vperm.xlu0 %1073, %v1305_v26  }
 0x2b6   :  { %344 = vperm.xlu2 %1072, %v1307_v27  }
 0x2bd   :  { %324 = vperm.xlu1 %1070, %v1307_v27   ;;  %1076 = vset.pattern.permute.xlu0 %v1198_v28 }
 0x2be   :  { %1075 = vset.pattern.permute.xlu2 %v1198_v28  ;;  %376 = vperm.xlu0 %1076, %v1305_v26  }
 0x2bf   :  { %372 = vperm.xlu2 %1075, %v1299_v22  }
 0x2c5   :  { %1074 = vset.pattern.permute.xlu1 %v1194_v33  ;;  %v1203_v33 = vmov 7  }
 0x2c6   :  { %340 = vperm.xlu1 %1074, %v1294_v16   ;;  %1079 = vset.pattern.permute.xlu0 %v1199_v29 }
 0x2c7   :  { %384 = vperm.xlu2 %1075, %v1307_v27   ;;  %416 = vperm.xlu0 %1079, %v1305_v26  }
 0x2ce   :  { %1077 = vset.pattern.permute.xlu1 %v1198_v28 }
 0x2cf   :  { %380 = vperm.xlu1 %1077, %v1294_v16   ;;  %1078 = vset.pattern.permute.xlu2 %v1199_v29 }
 0x2d0   :  { %1082 = vset.pattern.permute.xlu0 %v1200_v30  ;;  %412 = vperm.xlu2 %1078, %v1299_v22  }
 0x2d1   :  { %456 = vperm.xlu0 %1082, %v1305_v26  }
 0x2d7   :  { %1080 = vset.pattern.permute.xlu1 %v1199_v29 }
 0x2d8   :  { %420 = vperm.xlu1 %1080, %v1294_v16   ;;  %424 = vperm.xlu2 %1078, %v1307_v27  }
 0x2d9   :  { %1086 = vset.pattern.permute.xlu0 %v1201_v31 }
 0x2da   :  { %480 = vperm.xlu0 %1086, %v1294_v16  }
 0x2e0   :  { %1083 = vset.pattern.permute.xlu1 %v1200_v30  ;;  %1081 = vset.pattern.permute.xlu2 %v1200_v30 }
 0x2e1   :  { %460 = vperm.xlu1 %1083, %v1294_v16   ;;  %452 = vperm.xlu2 %1081, %v1299_v22  }
 0x2e2   :  { %1089 = vset.pattern.permute.xlu0 %v1202_v32 }
 0x2e3   :  { %520 = vperm.xlu0 %1089, %v1294_v16  }
 0x2e9   :  { %1084 = vset.pattern.permute.xlu1 %v1201_v31  ;;  %464 = vperm.xlu2 %1081, %v1307_v27  }
 0x2ea   :  { %472 = vperm.xlu1 %1084, %v1299_v22  }
 0x2eb   :  { %1092 = vset.pattern.permute.xlu0 %v1203_v33 }
 0x2ec   :  { %560 = vperm.xlu0 %1092, %v1294_v16  }
 0x2f1   :  { %1085 = vset.pattern.permute.xlu2 %v1201_v31  ;;  %v1441_v31 = vperm.slane %v1269_v51, 0 }
 0x2f2   :  { %484 = vperm.xlu1 %1084, %v1307_v27   ;;  %476 = vperm.xlu2 %1085, %v1305_v26  }
 0x2f4   :  { %1095 = vset.pattern.permute.xlu0 %v1204_v34 }
 0x2f5   :  { %804 = vperm.xlu0 %1095, %v1307_v27  }
 0x2fa   :  { %1087 = vset.pattern.permute.xlu1 %v1202_v32  ;;  %1088 = vset.pattern.permute.xlu2 %v1202_v32 }
 0x2fb   :  { %512 = vperm.xlu1 %1087, %v1299_v22   ;;  %516 = vperm.xlu2 %1088, %v1305_v26  }
 0x2fd   :  { %800 = vperm.xlu0 %1095, %v1294_v16  }
 0x2ff   :  { %v1337_v35 = vpop.permute.xlu2 %319 }
 0x303   :  { %524 = vperm.xlu1 %1087, %v1307_v27   ;;  %1091 = vset.pattern.permute.xlu2 %v1203_v33 }
 0x304   :  { %556 = vperm.xlu2 %1091, %v1305_v26  }
 0x305   :  { %1100 = vset.pattern.permute.xlu0 %v1205_v36 }
 0x306   :  { %840 = vperm.xlu0 %1100, %v1294_v16  }
 0x308   :  { %v1342_v37 = vpop.permute.xlu2 %332 }
 0x30b   :  { %1090 = vset.pattern.permute.xlu1 %v1203_v33 }
 0x30c   :  { %552 = vperm.xlu1 %1090, %v1299_v22   ;;  %1094 = vset.pattern.permute.xlu2 %v1206_v38 }
 0x30d   :  { %756 = vperm.xlu2 %1094, %v1305_v26  }
 0x30e   :  { %1103 = vset.pattern.permute.xlu0 %v1207_v39 }
 0x30f   :  { %664 = vperm.xlu0 %1103, %v1307_v27  }
 0x310   :  { %v1348_v40 = vpop.permute.xlu2 %344 }
 0x314   :  { %564 = vperm.xlu1 %1090, %v1307_v27  }
 0x315   :  { %1096 = vset.pattern.permute.xlu2 %v1204_v34 }
 0x316   :  { %796 = vperm.xlu2 %1096, %v1305_v26  }
 0x317   :  { %1106 = vset.pattern.permute.xlu0 %v1208_v41 }
 0x318   :  { %704 = vperm.xlu0 %1106, %v1307_v27  }
 0x319   :  { %v1354_v42 = vpop.permute.xlu2 %372 }
 0x31c   :  { %1093 = vset.pattern.permute.xlu1 %v1206_v38 }
 0x31d   :  { %764 = vperm.xlu1 %1093, %v1307_v27   ;;  %v1357_v43 = vpop.permute.xlu0 %309 }
 0x31e   :  { %1098 = vset.pattern.permute.xlu2 %v1206_v38 }
 0x31f   :  { %752 = vperm.xlu2 %1098, %v1299_v22  }
 0x320   :  { %1108 = vset.pattern.permute.xlu0 %v1209_v44 }
 0x321   :  { %612 = vperm.xlu0 %1108, %v1299_v22   ;;  %v1361_v45 = vpop.permute.xlu2 %384 }
 0x325   :  { %760 = vperm.xlu1 %1093, %v1294_v16  }
 0x327   :  { %v1364_v46 = vpop.permute.xlu1 %314  ;;  %1099 = vset.pattern.permute.xlu2 %v1204_v34  ;;  %v337_v47 = vpop.permute.xlu0 %336 }
 0x328   :  { %792 = vperm.xlu2 %1099, %v1299_v22   ;;  %v348_v12 = vmul.f32 %v337_v47, %v1273_v59 }
 0x329   :  { %1112 = vset.pattern.permute.xlu0 %v1207_v39 }
 0x32a   :  { %652 = vperm.xlu0 %1112, %v1299_v22   ;;  %v1369_v48 = vpop.permute.xlu2 %412 }
 0x32d   :  { %1097 = vset.pattern.permute.xlu1 %v1205_v36 }
 0x32e   :  { %844 = vperm.xlu1 %1097, %v1307_v27  }
 0x32f   :  { %v1372_v50 = vpop.permute.xlu1 %324 }
 0x330   :  { %1101 = vset.pattern.permute.xlu2 %v1209_v44  ;;  %v377_v52 = vpop.permute.xlu0 %376 }
 0x331   :  { %624 = vperm.xlu2 %1101, %v1307_v27   ;;  %v388_v19 = vmul.f32 %v377_v52, %v1273_v59  ;;  %v1462_v52 = vperm.slane %v1269_v51, 1 }
 0x332   :  { %1115 = vset.pattern.permute.xlu0 %v1210_v53  ;;  %v1375_v54 = vpop.permute.xlu2 %424 }
 0x333   :  { %596 = vperm.xlu0 %1115, %v1305_v26  }
 0x336   :  { %836 = vperm.xlu1 %1097, %v1305_v26  }
 0x338   :  { %v341_v55 = vpop.permute.xlu1 %340 }
 0x339   :  { %v349_v56 = vmul.f32 %v341_v55, %v1275_v60  ;;  %616 = vperm.xlu2 %1101, %v1305_v26   ;;  %v417_v57 = vpop.permute.xlu0 %416 }
 0x33a   :  { %v428_v24 = vmul.f32 %v417_v57, %v1273_v59 }
 0x33b   :  { %v1381_v58 = vpop.permute.xlu2 %452  ;;  %359 = vrot.lane.b32.xlu0 %v349_v56, %s1197_s6 }
 0x33e   :  { %832 = vperm.xlu1 %1097, %v1299_v22  }
 0x341   :  { %v381_v61 = vpop.permute.xlu1 %380  ;;  %1105 = vset.pattern.permute.xlu2 %v1207_v39 }
 0x342   :  { %v389_v62 = vmul.f32 %v381_v61, %v1275_v60  ;;  %656 = vperm.xlu2 %1105, %v1305_v26  }
 0x343   :  { %v1388_v63 = vpop.permute.xlu0 %456  ;;  %v1390_v0 = vpop.permute.xlu2 %464 }
 0x344   :  { %399 = vrot.lane.b32.xlu0 %v389_v62, %s1196_s5 }
 0x346   :  { %1102 = vset.pattern.permute.xlu1 %v1211_v1 }
 0x347   :  { %744 = vperm.xlu1 %1102, %v1307_v27  }
 0x34a   :  { %v421_v2 = vpop.permute.xlu1 %420  ;;  %1110 = vset.pattern.permute.xlu2 %v1208_v41 }
 0x34b   :  { %v429_v3 = vmul.f32 %v421_v2, %v1275_v60  ;;  %696 = vperm.xlu2 %1110, %v1305_v26  }
 0x34c   :  { %v481_v4 = vpop.permute.xlu0 %480  ;;  %v1397_v5 = vpop.permute.xlu2 %476 }
 0x34d   :  { %439 = vrot.lane.b32.xlu0 %v429_v3, %s1212_s3  ;;  %v489_v34 = vmul.f32 %v481_v4, %v1413_v13 }
 0x34f   :  { %736 = vperm.xlu1 %1102, %v1305_v26  }
 0x353   :  { %v1401_v6 = vpop.permute.xlu1 %460  ;;  %1114 = vset.pattern.permute.xlu2 %v1210_v53 }
 0x354   :  { %604 = vperm.xlu2 %1114, %v1307_v27   ;;  %v1433_v27 = vperm.slane %v1267_v49, 0 }
 0x355   :  { %v521_v7 = vpop.permute.xlu0 %520  ;;  %v1404_v8 = vpop.permute.xlu2 %516 }
 0x356   :  { %v529_v56 = vmul.f32 %v521_v7, %v1413_v13 }
 0x357   :  { %1104 = vset.pattern.permute.xlu1 %v1209_v44 }
 0x358   :  { %620 = vperm.xlu1 %1104, %v1294_v16  }
 0x35c   :  { %v473_v9 = vpop.permute.xlu1 %472  ;;  %600 = vperm.xlu2 %1114, %v1294_v16  }
 0x35d   :  { %v487_v30 = vmul.f32 %v473_v9, %v1433_v27 }
 0x35e   :  { %v561_v10 = vpop.permute.xlu0 %560  ;;  %v1408_v11 = vpop.permute.xlu2 %556 }
 0x35f   :  { %v569_v38 = vmul.f32 %v561_v10, %v1413_v13 }
 0x360   :  { %1107 = vset.pattern.permute.xlu1 %v1211_v1 }
 0x361   :  { %740 = vperm.xlu1 %1107, %v1294_v16  }
 0x364   :  { %v485_v14 = vpop.permute.xlu1 %484  ;;  %357 = vrot.lane.b32.xlu2 %v348_v12, %s1197_s6 }
 0x365   :  { %v490_v15 = vmul.f32 %v485_v14, %v1413_v13 }
 0x367   :  { %v1417_v17 = vpop.permute.xlu0 %804  ;;  %v1419_v18 = vpop.permute.xlu2 %756  ;;  %501 = vrot.lane.b32.xlu0 %v490_v15, %s1197_s6  ;;  %v427_v15 = vmul.f32 %v1369_v48, %v1273_v59  ;;  %v430_v48 = vmul.f32 %v1375_v54, %v1275_v60  ;;  %v328_v54 = vmul.f32 %v1364_v46, %v1273_v59 }
 0x368   :  { %v810_v46 = vmul.f32 %v1417_v17, %v1462_v52  ;;  %v467_v17 = vmul.f32 %v1381_v58, %v1273_v59 }
 0x369   :  { %1109 = vset.pattern.permute.xlu1 %v1207_v39  ;;  %v347_v39 = vmul.f32 %v1342_v37, %v1273_v59  ;;  %v350_v37 = vmul.f32 %v1348_v40, %v1275_v60 }
 0x36a   :  { %660 = vperm.xlu1 %1109, %v1294_v16  }
 0x36c   :  { %397 = vrot.lane.b32.xlu2 %v388_v19, %s1196_s5  ;;  %v329_v19 = vmul.f32 %v1337_v35, %v1275_v60 }
 0x36d   :  { %v513_v20 = vpop.permute.xlu1 %512 }
 0x36f   :  { %v1426_v21 = vpop.permute.xlu0 %800 }
 0x370   :  { %v797_v23 = vpop.permute.xlu2 %796 }
 0x371   :  { %v808_v32 = vmul.f32 %v797_v23, %v1441_v31 }
 0x372   :  { %1111 = vset.pattern.permute.xlu1 %v1211_v1  ;;  %v387_v1 = vmul.f32 %v1354_v42, %v1273_v59 }
 0x373   :  { %732 = vperm.xlu1 %1111, %v1299_v22  }
 0x374   :  { %437 = vrot.lane.b32.xlu2 %v428_v24, %s1212_s3 }
 0x375   :  { %v525_v25 = vpop.permute.xlu1 %524 }
 0x376   :  { %v530_v26 = vmul.f32 %v525_v25, %v1413_v13 }
 0x378   :  { %v841_v28 = vpop.permute.xlu0 %840  ;;  %541 = vrot.lane.b32.xlu0 %v530_v26, %s1196_s5 }
 0x379   :  { %v1436_v29 = vpop.permute.xlu2 %752  ;;  %v849_v53 = vmul.f32 %v841_v28, %v1462_v52 }
 0x37b   :  { %1113 = vset.pattern.permute.xlu1 %v1208_v41  ;;  %v527_v41 = vmul.f32 %v513_v20, %v1433_v27 }
 0x37c   :  { %700 = vperm.xlu1 %1113, %v1294_v16   ;;  %495 = vrot.lane.b32.xlu2 %v487_v30, %s1197_s6 }
 0x37e   :  { %v553_v49 = vpop.permute.xlu1 %552 }
 0x37f   :  { %v567_v2 = vmul.f32 %v553_v49, %v1433_v27  ;;  %v488_v49 = vmul.f32 %v1397_v5, %v1433_v27  ;;  %v568_v5 = vmul.f32 %v1408_v11, %v1433_v27 }
 0x380   :  { %817 = vrot.lane.b32.xlu0 %v808_v32, %s1196_s5 }
 0x381   :  { %v1447_v33 = vpop.permute.xlu0 %664 }
 0x382   :  { %v1450_v36 = vpop.permute.xlu2 %792  ;;  %v670_v58 = vmul.f32 %v1447_v33, %v1413_v13 }
 0x384   :  { %692 = vperm.xlu1 %1113, %v1299_v22   ;;  %499 = vrot.lane.b32.xlu2 %v489_v34, %s1197_s6 }
 0x386   :  { %v565_v16 = vpop.permute.xlu1 %564 }
 0x388   :  { %579 = vrot.lane.b32.xlu0 %v569_v38, %s1212_s3 }
 0x38a   :  { %v705_v44 = vpop.permute.xlu0 %704 }
 0x38b   :  { %v1459_v47 = vpop.permute.xlu2 %624  ;;  %v710_v4 = vmul.f32 %v705_v44, %v1413_v13 }
 0x38c   :  { %355 = vrot.lane.b32.xlu1 %v347_v39, %s1197_s6  ;;  %535 = vrot.lane.b32.xlu2 %v527_v41, %s1196_s5 }
 0x38f   :  { %v765_v55 = vpop.permute.xlu1 %764 }
 0x390   :  { %859 = vrot.lane.b32.xlu0 %v849_v53, %s1212_s3  ;;  %v770_v9 = vmul.f32 %v765_v55, %v1462_v52  ;;  %v528_v53 = vmul.f32 %v1404_v8, %v1433_v27 }
 0x393   :  { %v1471_v57 = vpop.permute.xlu0 %612  ;;  %v1473_v61 = vpop.permute.xlu2 %616 }
 0x394   :  { %361 = vrot.lane.b32.xlu1 %v350_v37, %s1197_s6  ;;  %539 = vrot.lane.b32.xlu2 %v529_v56, %s1196_s5  ;;  %v767_v56 = vmul.f32 %v1436_v29, %v1441_v31 }
 0x397   :  { %v761_v62 = vpop.permute.xlu1 %760 }
 0x398   :  { %592 = vperm.xlu0 %1115, %v1299_v22   ;;  %v390_v22 = vmul.f32 %v1361_v45, %v1275_v60  ;;  %v768_v45 = vmul.f32 %v1419_v18, %v1441_v31  ;;  %v570_v18 = vmul.f32 %v565_v16, %v1413_v13  ;;  %v769_v34 = vmul.f32 %v761_v62, %v1462_v52 }
 0x39c   :  { %v653_v3 = vpop.permute.xlu0 %652  ;;  %395 = vrot.lane.b32.xlu1 %v387_v1, %s1196_s5  ;;  %v1482_v40 = vpop.permute.xlu2 %656  ;;  %575 = vrot.lane.b32.xlu2 %v567_v2, %s1212_s3 }
 0x39d   :  { %v667_v23 = vmul.f32 %v653_v3, %v1433_v27 }
 0x3a0   :  { %v845_v7 = vpop.permute.xlu1 %844  ;;  %721 = vrot.lane.b32.xlu0 %v710_v4, %s1212_s3 }
 0x3a1   :  { %v850_v11 = vmul.f32 %v845_v7, %v1462_v52  ;;  %v807_v7 = vmul.f32 %v1450_v36, %v1441_v31 }
 0x3a4   :  { %401 = vrot.lane.b32.xlu1 %v390_v22, %s1196_s5  ;;  %781 = vrot.lane.b32.xlu2 %v770_v9, %s1197_s6  ;;  %v809_v22 = vmul.f32 %v1426_v21, %v1462_v52 }
 0x3a5   :  { %v1492_v42 = vpop.permute.xlu0 %596  ;;  %v697_v10 = vpop.permute.xlu2 %696 }
 0x3a6   :  { %v708_v12 = vmul.f32 %v697_v10, %v1433_v27  ;;  %v469_v10 = vmul.f32 %v1401_v6, %v1275_v60  ;;  %v668_v6 = vmul.f32 %v1482_v40, %v1433_v27 }
 0x3a8   :  { %v837_v14 = vpop.permute.xlu1 %836  ;;  %717 = vrot.lane.b32.xlu0 %v708_v12, %s1212_s3 }
 0x3a9   :  { %v848_v2 = vmul.f32 %v837_v14, %v1441_v31 }
 0x3ac   :  { %435 = vrot.lane.b32.xlu1 %v427_v15, %s1212_s3  ;;  %777 = vrot.lane.b32.xlu2 %v768_v45, %s1197_s6  ;;  %v630_v45 = vmul.f32 %v1459_v47, %v1413_v13 }
 0x3ad   :  { %v360_v20 = vpop.permute.xlu0 %359 }
 0x3ae   :  { %v369_v24 = vadd.f32 %v360_v20, %v329_v19  ;;  %v1505_v25 = vpop.permute.xlu2 %604 }
 0x3b0   :  { %v833_v26 = vpop.permute.xlu1 %832  ;;  %675 = vrot.lane.b32.xlu0 %v667_v23, %s1196_s5  ;;  %v628_v23 = vmul.f32 %v1473_v61, %v1433_v27 }
 0x3b1   :  { %v847_v15 = vmul.f32 %v833_v26, %v1441_v31 }
 0x3b4   :  { %441 = vrot.lane.b32.xlu1 %v430_v48, %s1212_s3  ;;  %581 = vrot.lane.b32.xlu2 %v570_v18, %s1212_s3  ;;  %v327_v48 = vmul.f32 %v1357_v43, %v1273_v59 }
 0x3b6   :  { %v1513_v35 = vpop.permute.xlu2 %600  ;;  %v400_v28 = vpop.permute.xlu0 %399 }
 0x3b7   :  { %v409_v30 = vadd.f32 %v400_v28, %v369_v24 }
 0x3b9   :  { %v745_v32 = vpop.permute.xlu1 %744 }
 0x3ba   :  { %v750_v18 = vmul.f32 %v745_v32, %v1413_v13 }
 0x3bc   :  { %497 = vrot.lane.b32.xlu1 %v488_v49, %s1197_s6  ;;  %779 = vrot.lane.b32.xlu2 %v769_v34, %s1197_s6  ;;  %v627_v34 = vmul.f32 %v1471_v57, %v1433_v27  ;;  %v470_v57 = vmul.f32 %v1390_v0, %v1275_v60 }
 0x3be   :  { %v358_v38 = vpop.permute.xlu2 %357 }
 0x3bf   :  { %v368_v16 = vadd.f32 %v358_v38, %v328_v54  ;;  %v440_v39 = vpop.permute.xlu0 %439  ;;  %v330_v54 = vmul.f32 %v1372_v50, %v1275_v60 }
 0x3c0   :  { %v1522_v41 = vadd.f32 %v440_v39, %v409_v30 }
 0x3c1   :  { %v1524_v44 = vpop.permute.xlu1 %736 }
 0x3c4   :  { %537 = vrot.lane.b32.xlu1 %v528_v53, %s1196_s5  ;;  %577 = vrot.lane.b32.xlu2 %v568_v5, %s1212_s3 }
 0x3c6   :  { %v398_v55 = vpop.permute.xlu2 %397 }
 0x3c7   :  { %v408_v37 = vadd.f32 %v398_v55, %v368_v16 }
 0x3ca   :  { %v621_v62 = vpop.permute.xlu1 %620 }
 0x3cb   :  { %v629_v40 = vmul.f32 %v621_v62, %v1413_v13 }
 0x3cc   :  { %775 = vrot.lane.b32.xlu2 %v767_v56, %s1197_s6  ;;  %821 = vrot.lane.b32.xlu1 %v810_v46, %s1196_s5 }
 0x3ce   :  { %v438_v8 = vpop.permute.xlu2 %437 }
 0x3cf   :  { %v1538_v1 = vadd.f32 %v438_v8, %v408_v37 }
 0x3d3   :  { %v1542_v3 = vpop.permute.xlu1 %740 }
 0x3d4   :  { %857 = vrot.lane.b32.xlu2 %v848_v2, %s1212_s3  ;;  %861 = vrot.lane.b32.xlu1 %v850_v11, %s1212_s3 }
 0x3d6   :  { %v496_v29 = vpop.permute.xlu2 %495 }
 0x3d7   :  { %v1548_v4 = vadd.f32 %v496_v29, %v467_v17 }
 0x3d9   :  { %v502_v43 = vpop.permute.xlu0 %501 }
 0x3da   :  { %v510_v50 = vadd.f32 %v502_v43, %v470_v57 }
 0x3dc   :  { %v661_v9 = vpop.permute.xlu1 %660  ;;  %815 = vrot.lane.b32.xlu2 %v807_v7, %s1196_s5  ;;  %819 = vrot.lane.b32.xlu1 %v809_v22, %s1196_s5 }
 0x3dd   :  { %v669_v24 = vmul.f32 %v661_v9, %v1413_v13 }
 0x3de   :  { %v500_v12 = vpop.permute.xlu2 %499 }
 0x3df   :  { %v509_v14 = vadd.f32 %v500_v12, %v469_v10  ;;  %v748_v10 = vmul.f32 %v1524_v44, %v1433_v27  ;;  %v749_v44 = vmul.f32 %v1542_v3, %v1413_v13 }
 0x3e4   :  { %855 = vrot.lane.b32.xlu1 %v847_v15, %s1212_s3  ;;  %681 = vrot.lane.b32.xlu2 %v670_v58, %s1196_s5 }
 0x3e5   :  { %v1563_v21 = vpop.permute.xlu1 %732 }
 0x3e6   :  { %v536_v36 = vpop.permute.xlu2 %535 }
 0x3e7   :  { %v547_v7 = vadd.f32 %v536_v36, %v1548_v4 }
 0x3ea   :  { %v542_v46 = vpop.permute.xlu0 %541 }
 0x3eb   :  { %v550_v11 = vadd.f32 %v542_v46, %v510_v50 }
 0x3ec   :  { %641 = vrot.lane.b32.xlu1 %v630_v45, %s1197_s6  ;;  %677 = vrot.lane.b32.xlu2 %v668_v6, %s1196_s5 }
 0x3ee   :  { %v701_v33 = vpop.permute.xlu1 %700  ;;  %v540_v19 = vpop.permute.xlu2 %539 }
 0x3ef   :  { %v1571_v20 = vadd.f32 %v540_v19, %v509_v14  ;;  %v709_v53 = vmul.f32 %v701_v33, %v1413_v13 }
 0x3f2   :  { %v818_v58 = vpop.permute.xlu0 %817 }
 0x3f4   :  { %637 = vrot.lane.b32.xlu1 %v628_v23, %s1197_s6  ;;  %679 = vrot.lane.b32.xlu2 %v669_v24, %s1196_s5 }
 0x3f6   :  { %v693_v47 = vpop.permute.xlu1 %692  ;;  %v576_v26 = vpop.permute.xlu2 %575 }
 0x3f7   :  { %v707_v37 = vmul.f32 %v693_v47, %v1433_v27  ;;  %v587_v9 = vadd.f32 %v576_v26, %v547_v7  ;;  %v468_v47 = vmul.f32 %v1388_v63, %v1273_v59  ;;  %v747_v63 = vmul.f32 %v1563_v21, %v1433_v27 }
 0x3fa   :  { %v580_v36 = vpop.permute.xlu0 %579 }
 0x3fb   :  { %v589_v59 = vadd.f32 %v580_v36, %v1571_v20 }
 0x3fc   :  { %639 = vrot.lane.b32.xlu1 %v629_v40, %s1197_s6 }
 0x3fe   :  { %v356_v28 = vpop.permute.xlu1 %355  ;;  %v782_v30 = vpop.permute.xlu2 %781 }
 0x3ff   :  { %v367_v61 = vadd.f32 %v356_v28, %v327_v48  ;;  %v790_v49 = vadd.f32 %v782_v30, %v750_v18 }
 0x404   :  { %635 = vrot.lane.b32.xlu1 %v627_v34, %s1197_s6  ;;  %v860_v34 = vpop.permute.xlu0 %859 }
 0x406   :  { %v362_v38 = vpop.permute.xlu1 %361  ;;  %v778_v16 = vpop.permute.xlu2 %777 }
 0x407   :  { %v370_v39 = vadd.f32 %v362_v38, %v330_v54  ;;  %v788_v14 = vadd.f32 %v778_v16, %v748_v10 }
 0x409   :  { %v828_v15 = vadd.f32 %v818_v58, %v788_v14 }
 0x40c   :  { %719 = vrot.lane.b32.xlu1 %v709_v53, %s1212_s3 }
 0x40e   :  { %v396_v32 = vpop.permute.xlu1 %395  ;;  %v582_v5 = vpop.permute.xlu2 %581 }
 0x40f   :  { %v407_v55 = vadd.f32 %v396_v32, %v367_v61  ;;  %v590_v2 = vadd.f32 %v582_v5, %v550_v11  ;;  %v593_v5 = vpop.permute.xlu0 %592 }
 0x414   :  { %715 = vrot.lane.b32.xlu1 %v707_v37, %s1212_s3 }
 0x416   :  { %v402_v56 = vpop.permute.xlu1 %401  ;;  %v780_v62 = vpop.permute.xlu2 %779 }
 0x417   :  { %v410_v8 = vadd.f32 %v402_v56, %v370_v39  ;;  %v789_v18 = vadd.f32 %v780_v62, %v749_v44  ;;  %v722_v57 = vpop.permute.xlu0 %721  ;;  %v610_v56 = vmul.f32 %v1505_v25, %v1413_v13 }
 0x41c   :  { %881 = vrot.lane.b32.xlu1 %v590_v2, %s1213_s7  ;;  %v608_v2 = vmul.f32 %v1492_v42, %v1433_v27 }
 0x41e   :  { %v436_v17 = vpop.permute.xlu1 %435  ;;  %v578_v29 = vpop.permute.xlu2 %577 }
 0x41f   :  { %v1595_v22 = vadd.f32 %v436_v17, %v407_v55  ;;  %v718_v50 = vpop.permute.xlu0 %717 }
 0x424   :  { %875 = vrot.lane.b32.xlu1 %v587_v9, %s1213_s7 }
 0x426   :  { %v442_v60 = vpop.permute.xlu1 %441  ;;  %v776_v0 = vpop.permute.xlu2 %775 }
 0x427   :  { %v450_v12 = vadd.f32 %v442_v60, %v410_v8  ;;  %v787_v3 = vadd.f32 %v776_v0, %v747_v63  ;;  %v676_v17 = vpop.permute.xlu0 %675 }
 0x42e   :  { %v498_v45 = vpop.permute.xlu1 %497  ;;  %v858_v6 = vpop.permute.xlu2 %857 }
 0x42f   :  { %v868_v33 = vadd.f32 %v858_v6, %v828_v15  ;;  %v508_v40 = vadd.f32 %v498_v45, %v468_v47 }
 0x431   :  { %897 = vrot.lane.b32.xlu0 %v868_v33, %s1213_s7 }
 0x436   :  { %v538_v19 = vpop.permute.xlu1 %537 }
 0x437   :  { %v548_v48 = vadd.f32 %v538_v19, %v508_v40 }
 0x439   :  { %v588_v30 = vadd.f32 %v578_v29, %v548_v48 }
 0x43e   :  { %v822_v23 = vpop.permute.xlu1 %821 }
 0x43f   :  { %v830_v4 = vadd.f32 %v822_v23, %v790_v49  ;;  %v816_v49 = vpop.permute.xlu2 %815  ;;  %v1214_v23 = vmov 80  }
 0x440   :  { %v827_v16 = vadd.f32 %v816_v49, %v787_v3  ;;  %1116 = vset.pattern.permute.xlu0 %v1214_v23 }
 0x446   :  { %v862_v24 = vpop.permute.xlu1 %861 }
 0x447   :  { %v870_v26 = vadd.f32 %v862_v24, %v830_v4  ;;  %v682_v37 = vpop.permute.xlu2 %681 }
 0x449   :  { %901 = vrot.lane.b32.xlu2 %v870_v26, %s1213_s7 }
 0x44e   :  { %v820_v28 = vpop.permute.xlu1 %819 }
 0x44f   :  { %v829_v61 = vadd.f32 %v820_v28, %v789_v18  ;;  %v678_v46 = vpop.permute.xlu2 %677  ;;  %v609_v18 = vmul.f32 %v1513_v35, %v1413_v13 }
 0x451   :  { %v869_v54 = vadd.f32 %v860_v34, %v829_v61  ;;  %877 = vrot.lane.b32.xlu2 %v588_v30, %s1213_s7 }
 0x453   :  { %899 = vrot.lane.b32.xlu0 %v869_v54, %s1213_s7 }
 0x456   :  { %v856_v38 = vpop.permute.xlu1 %855 }
 0x457   :  { %v867_v39 = vadd.f32 %v856_v38, %v827_v16  ;;  %v680_v8 = vpop.permute.xlu2 %679 }
 0x459   :  { %879 = vrot.lane.b32.xlu2 %v589_v59, %s1213_s7 }
 0x45e   :  { %v642_v53 = vpop.permute.xlu1 %641 }
 0x45f   :  { %v650_v62 = vadd.f32 %v642_v53, %v610_v56 }
 0x461   :  { %895 = vrot.lane.b32.xlu2 %v867_v39, %s1213_s7  ;;  %v690_v11 = vadd.f32 %v682_v37, %v650_v62 }
 0x463   :  { %v730_v9 = vadd.f32 %v722_v57, %v690_v11 }
 0x466   :  { %v638_v43 = vpop.permute.xlu1 %637 }
 0x467   :  { %v648_v7 = vadd.f32 %v638_v43, %v608_v2 }
 0x469   :  { %v688_v14 = vadd.f32 %v678_v46, %v648_v7 }
 0x46b   :  { %v728_v25 = vadd.f32 %v718_v50, %v688_v14 }
 0x46e   :  { %v640_v32 = vpop.permute.xlu1 %639 }
 0x46f   :  { %v649_v61 = vadd.f32 %v640_v32, %v609_v18 }
 0x471   :  { %v689_v59 = vadd.f32 %v680_v8, %v649_v61 }
 0x476   :  { %v636_v55 = vpop.permute.xlu1 %635 }
 0x47e   :  { %v720_v20 = vpop.permute.xlu1 %719 }
 0x47f   :  { %v729_v63 = vadd.f32 %v720_v20, %v689_v59 }
 0x486   :  { %v716_v21 = vpop.permute.xlu1 %715 }
 0x48e   :  { %v882_v29 = vpop.permute.xlu1 %881 }
 0x48f   :  { %v890_v0 = vadd.f32 %v882_v29, %v450_v12  ;;  %v607_v12 = vmul.f32 %v593_v5, %v1433_v27  ;;  %v963_v27 = vrot.slane %v1269_v51, 1 }
 0x491   :  { %v647_v47 = vadd.f32 %v636_v55, %v607_v12 }
 0x493   :  { %v687_v40 = vadd.f32 %v676_v17, %v647_v47 }
 0x495   :  { %v727_v48 = vadd.f32 %v716_v21, %v687_v40 }
 0x496   :  { %v876_v44 = vpop.permute.xlu1 %875 }
 0x497   :  { %v887_v28 = vadd.f32 %v876_v44, %v1595_v22 }
 0x4a3   :  { %v902_v60 = vpop.permute.xlu2 %901  ;;  %v898_v45 = vpop.permute.xlu0 %897 }
 0x4a4   :  { %v910_v10 = vadd.f32 %v902_v60, %v730_v9  ;;  %v908_v33 = vadd.f32 %v898_v45, %v728_v25 }
 0x4a6   :  { %v914_v58 = vadd.f32 %v910_v10, %v890_v0 }
 0x4a8   :  { %v918_v15 = vadd.f32 %v914_v58, %v1462_v52 }
 0x4aa   :  { %1131 = vtanh.f32 %v918_v15 }
 0x4ab   :  { %v878_v6 = vpop.permute.xlu2 %877 }
 0x4ac   :  { %v888_v19 = vadd.f32 %v878_v6, %v1538_v1 }
 0x4ae   :  { %v912_v42 = vadd.f32 %v908_v33, %v888_v19 }
 0x4b0   :  { %v1132_v4 = vpop.eup %1131  ;;  %v916_v36 = vadd.f32 %v912_v42, %v1441_v31 }
 0x4b1   :  { %970 = vrot.lane.b32.xlu0 %v1132_v4, %s1212_s3 }
 0x4b2   :  { %1133 = vtanh.f32 %v916_v36 }
 0x4b3   :  { %v880_v24 = vpop.permute.xlu2 %879 }
 0x4b4   :  { %v889_v3 = vadd.f32 %v880_v24, %v1522_v41 }
 0x4b8   :  { %v1134_v26 = vpop.eup %1133 }
 0x4b9   :  { %933 = vrot.lane.b32.xlu1 %v1134_v26, %s1212_s3 }
 0x4bb   :  { %v896_v1 = vpop.permute.xlu2 %895 }
 0x4bc   :  { %v907_v30 = vadd.f32 %v896_v1, %v727_v48 }
 0x4be   :  { %v911_v34 = vadd.f32 %v907_v30, %v887_v28 }
 0x4c0   :  { %v915_v54 = vadd.f32 %v911_v34, %v1441_v31 }
 0x4c1   :  { %964 = vrot.lane.b32.xlu1 %v963_v27, %s1213_s7 }
 0x4c2   :  { %1135 = vtanh.f32 %v915_v54 }
 0x4c5   :  { %v900_v49 = vpop.permute.xlu0 %899 }
 0x4c6   :  { %v909_v38 = vadd.f32 %v900_v49, %v729_v63 }
 0x4c8   :  { %v1136_v16 = vpop.eup %1135  ;;  %v913_v13 = vadd.f32 %v909_v38, %v889_v3 }
 0x4c9   :  { %931 = vrot.lane.b32.xlu0 %v1136_v16, %s1212_s3 }
 0x4ca   :  { %v917_v35 = vadd.f32 %v913_v13, %v1462_v52 }
 0x4cc   :  { %1137 = vtanh.f32 %v917_v35 }
 0x4d1   :  { %924 = vperm.xlu0 %1116, %v1269_v51  }
 0x4d2   :  { %v1138_v22 = vpop.eup %1137 }
 0x4d3   :  { %968 = vrot.lane.b32.xlu2 %v1138_v22, %s1212_s3 }
 0x4db   :  { %927 = vrot.lane.b32.xlu2 %v1269_v51, %s1213_s7 }
 0x523   :  { %v971_v31 = vpop.permute.xlu0 %970 }
 0x524   :  { %1037 = vmatpush.xpose.msk.msrb.mxu3 %vm935_vm4, %v971_v31 }
 0x52b   :  { %v934_v41 = vpop.permute.xlu1 %933 }
 0x52c   :  { %1034 = vmatpush.xpose.msk.msrb.mxu2 %vm935_vm4, %v934_v41 }
 0x52d   :  { %v969_v39 = vpop.permute.xlu2 %968 }
 0x52e   :  { %1038 = vmatpush.xpose.msk.msrb.mxu3 %vm935_vm4, %v969_v39 }
 0x533   :  { %v965_v52 = vpop.permute.xlu1 %964 }
 0x534   :  { %1039 = vmatmul.msk.f32.vlgmr.msrb.gmra.mxu3 %vm935_vm4, %v965_v52 }
 0x535   :  { %v928_v43 = vpop.permute.xlu2 %927 }
 0x53b   :  { %v932_v53 = vpop.permute.xlu0 %931 }
 0x53c   :  { %1035 = vmatpush.xpose.msk.msrb.mxu2 %vm935_vm4, %v932_v53 }
 0x53f   :  { %1036 = vmatmul.msk.f32.vlgmr.msrb.gmra.mxu2 %vm935_vm4, %v928_v43 }
 0x543   :  { %v925_v51 = vpop.permute.xlu0 %924 }
 0x544   :  { %v972_v5 = vrot.slane %v925_v51, 1 }
 0x5b7   :  { %v997_v32 = vpop.f32.mrf.mxu3 }
 0x5b8   :  { %v998_v55 = vadd.f32 %v997_v32, %v972_v5 }
 0x5ba   :  { %v1000_v37 = vsel %vm935_vm4, %v998_v55, 0.0 }
 0x5bb   :  { %v1002_v46 = vrot.slane %v1000_v37, 7 }
 0x5c2   :  { %v959_v57 = vpop.f32.mrf.mxu2 }
 0x5c3   :  { %v960_v20 = vadd.f32 %v959_v57, %v925_v51 }
 0x5c5   :  { %v962_v50 = vsel %vm935_vm4, %v960_v20, 0.0 }
 0x5c6   :  { %v1005_v21 = vsel %vm1004_vm5, %v962_v50, %v1002_v46 }
 0x5c7   :  { %1006 = vst [vmem:[#allocation5] sm:$0x3] %v1005_v21 }
 0x5c8   :  { %1019 = dma.vmem_to_hbm [thread:$0]  %s1015_s9, 32, %s1017_s12, [#allocation4]  }
 0x5c9   :  { %1189 = dma.done.wait [#allocation4], 32  }
 0x5ca   :  { %1190 = vsyncadd [#allocation4], 4294967264 }
 0x5cb   :  { %1026 = vsyncpa [#allocation3], 1 }
 0x5cc   :  { %1027 = vsyncpa [#allocation4], 1 }

</bundles_post_ra>
